<compile_context>
chip_gen: v7x
topology: tpu7x:2x2x1
jax: 0.10.0
libtpu: 0.0.40
codegen_flags: <defaults>
</compile_context>

<pallas_src>
import math
import jax
import jax.numpy as jnp
from jax.experimental import pallas as pl
from jax.experimental.pallas import tpu as pltpu

# ---- module hyper-parameters (defaults from the PyTorch module) -------------
NUM_CHANNELS = 3
NUM_CLASSES = 2
KERNEL_SIZE = 3
STRIDE = 1
CONV_OUT_CHANNELS = 256
FC1_OUT = 128
SEQUENCE_LENGTH = 8                       # --sequence-length (required arg)
FEAT_DIM = 128                            # stand-in for resnet152 fc.in_features (=2048)

L_OUT = math.floor(1 + (SEQUENCE_LENGTH - KERNEL_SIZE) / STRIDE)  # conv output length
# MaxPool1d kernel == L_OUT, so the pooled sequence length is exactly 1.

OUT_PAD = 128                             # lane-dense padded logits width (>= NUM_CLASSES)
TB_MAX = 128                              # max batch rows per grid step


def _round_up(x, m):
    return ((x + m - 1) // m) * m


def _head_kernel(feat_ref, wconv_ref, bconv_ref, w1_ref, b1_ref, w2_ref, b2_ref,
                 out_ref):
    """TB batch rows per grid step: conv1d -> maxpool -> relu -> fc1 -> relu -> fc2."""
    tb = feat_ref.shape[0]

    # (TB, T, F) bf16 -> (TB*T, F).  T is a multiple of 8, so this collapse keeps
    # the (8,128) tiling intact (no relayout).
    f2d = feat_ref[...].reshape(tb * SEQUENCE_LENGTH, FEAT_DIM)

    # One MXU matmul for all K conv taps at once: wconv is (F, K*C_out) with
    # lane block k holding tap k.  z[b*T + t, k*C + o] = f[b, t, :] . w_k[:, o]
    z = jnp.dot(f2d, wconv_ref[...], preferred_element_type=jnp.float32)
    z = z.reshape(tb, SEQUENCE_LENGTH, KERNEL_SIZE * CONV_OUT_CHANNELS)

    # Conv1d (stride 1): y[b, l, o] = sum_k z[b, l+k, k*C_out + o]   (VPU adds only).
    y = z[:, 0:L_OUT, 0:CONV_OUT_CHANNELS]
    for k in range(1, KERNEL_SIZE):
        y = y + z[:, k:k + L_OUT,
                  k * CONV_OUT_CHANNELS:(k + 1) * CONV_OUT_CHANNELS]

    # MaxPool1d over the whole conv output; conv bias deferred past the max
    # (constant over l: max(y + b) == max(y) + b), then ReLU.
    pooled = jnp.max(y, axis=1) + bconv_ref[...]          # (TB, C_out) fp32
    pooled = jnp.maximum(pooled, 0.0)
    # dropout(p=0.0) == identity

    # fc1 + ReLU (bf16 operands, fp32 accumulate).
    h = jnp.dot(pooled.astype(jnp.bfloat16), w1_ref[...],
                preferred_element_type=jnp.float32) + b1_ref[...]
    h = jnp.maximum(h, 0.0)
    # dropout(p=0.0) == identity

    # fc2 (zero-padded to 128 output lanes for a lane-dense store).
    out = jnp.dot(h.astype(jnp.bfloat16), w2_ref[...],
                  preferred_element_type=jnp.float32) + b2_ref[...]
    out_ref[...] = out.astype(out_ref.dtype)              # (TB, OUT_PAD)


def resnet_onedconv_head(features, w_conv, b_conv, w1, b1, w2, b2):
    """features: (B, T, feat_dim) float32.  Returns logits (B, num_classes)."""
    B, T, F = features.shape
    assert T == SEQUENCE_LENGTH and F == FEAT_DIM

    # --- one-time parameter repacking (host/XLA side, cheap) -----------------
    # Conv1d weight (K, F, C_out) -> (F, K*C_out), bf16 for the MXU.
    w_conv_cat = jnp.transpose(w_conv, (1, 0, 2)).reshape(
        FEAT_DIM, KERNEL_SIZE * CONV_OUT_CHANNELS).astype(jnp.bfloat16)
    b_conv32 = b_conv.reshape(1, CONV_OUT_CHANNELS).astype(jnp.float32)
    w1_bf = w1.astype(jnp.bfloat16)
    b1_32 = b1.reshape(1, FC1_OUT).astype(jnp.float32)
    # fc2 padded to a lane-dense 128-wide output; extra lanes are zero.
    w2_pad = jnp.zeros((FC1_OUT, OUT_PAD), jnp.bfloat16)
    w2_pad = w2_pad.at[:, :NUM_CLASSES].set(w2.astype(jnp.bfloat16))
    b2_pad = jnp.zeros((1, OUT_PAD), jnp.float32)
    b2_pad = b2_pad.at[:, :NUM_CLASSES].set(b2.reshape(1, NUM_CLASSES).astype(jnp.float32))

    # --- batch tiling ---------------------------------------------------------
    if B <= TB_MAX:
        TB = _round_up(B, 8)              # whole batch in one grid step
    else:
        TB = TB_MAX
    B_pad = _round_up(B, TB)
    feats = features.astype(jnp.bfloat16)
    if B_pad != B:
        feats = jnp.pad(feats, ((0, B_pad - B), (0, 0), (0, 0)))
    grid = (B_pad // TB,)

    # NOTE: weight BlockSpecs have constant index_maps, so their blocks stay
    # resident across grid steps; they are small enough here that the default
    # double-buffering is irrelevant for VMEM headroom.
    out = pl.pallas_call(
        _head_kernel,
        out_shape=jax.ShapeDtypeStruct((B_pad, OUT_PAD), jnp.float32),
        grid_spec=pltpu.PrefetchScalarGridSpec(
            num_scalar_prefetch=0,
            grid=grid,
            in_specs=[
                pl.BlockSpec((TB, SEQUENCE_LENGTH, FEAT_DIM), lambda b: (b, 0, 0)),
                pl.BlockSpec((FEAT_DIM, KERNEL_SIZE * CONV_OUT_CHANNELS), lambda b: (0, 0)),
                pl.BlockSpec((1, CONV_OUT_CHANNELS), lambda b: (0, 0)),
                pl.BlockSpec((CONV_OUT_CHANNELS, FC1_OUT), lambda b: (0, 0)),
                pl.BlockSpec((1, FC1_OUT), lambda b: (0, 0)),
                pl.BlockSpec((FC1_OUT, OUT_PAD), lambda b: (0, 0)),
                pl.BlockSpec((1, OUT_PAD), lambda b: (0, 0)),
            ],
            out_specs=pl.BlockSpec((TB, OUT_PAD), lambda b: (b, 0)),
        ),
        compiler_params=pltpu.CompilerParams(
            dimension_semantics=("parallel",),     # shards batch tiles across TCs on v7x
        ),
    )(feats, w_conv_cat, b_conv32, w1_bf, b1_32, w2_pad, b2_pad)

    return out[:B, :NUM_CLASSES]


def standin_backbone(x_3d, proj):
    """Deterministic stand-in for the frozen resnet152 backbone (plain-JAX glue).

    x_3d: (B, T, C, H, W)  ->  features (B, T, feat_dim)
    """
    # TODO(synk): real frozen resnet152 backbone not translated; using GAP + fixed projection.
    gap = jnp.mean(x_3d, axis=(3, 4))                 # (B, T, C)
    return jnp.einsum("btc,cf->btf", gap, proj)       # (B, T, feat_dim)


def reference_head(features, w_conv, b_conv, w1, b1, w2, b2):
    """Pure-JAX reference of the head (same bf16-operand / fp32-accumulate path)."""
    f = features.astype(jnp.bfloat16)
    wk = w_conv.astype(jnp.bfloat16)
    acc = jnp.zeros((features.shape[0], L_OUT, CONV_OUT_CHANNELS), jnp.float32)
    for k in range(KERNEL_SIZE):
        acc = acc + jnp.einsum("blf,fo->blo", f[:, k:k + L_OUT, :], wk[k],
                               preferred_element_type=jnp.float32)
    pooled = jnp.max(acc, axis=1) + b_conv.reshape(1, CONV_OUT_CHANNELS)
    pooled = jnp.maximum(pooled, 0.0)
    h = jnp.dot(pooled.astype(jnp.bfloat16), w1.astype(jnp.bfloat16),
                preferred_element_type=jnp.float32) + b1.reshape(1, FC1_OUT)
    h = jnp.maximum(h, 0.0)
    out = jnp.dot(h.astype(jnp.bfloat16), w2.astype(jnp.bfloat16),
                  preferred_element_type=jnp.float32) + b2.reshape(1, NUM_CLASSES)
    return out


if __name__ == "__main__":
    key = jax.random.PRNGKey(0)
    k_in, k_proj, k_wc, k_bc, k_w1, k_b1, k_w2, k_b2 = jax.random.split(key, 8)

    # Small input consistent with the module: (B, T, C=3, H, W)
    B, T, C, H, W = 2, SEQUENCE_LENGTH, NUM_CHANNELS, 16, 16
    x_3d = jax.random.normal(k_in, (B, T, C, H, W), jnp.float32)

    # Deterministic parameter init (synthetic; shapes match the PyTorch module,
    # with the Conv1d weight (C_out, feat, K) pre-transposed to (K, feat, C_out)
    # and Linear weights (out, in) pre-transposed to (in, out)).
    proj = jax.random.normal(k_proj, (C, FEAT_DIM), jnp.float32) * 0.1
    w_conv = jax.random.normal(k_wc, (KERNEL_SIZE, FEAT_DIM, CONV_OUT_CHANNELS), jnp.float32) * 0.05
    b_conv = jax.random.normal(k_bc, (1, CONV_OUT_CHANNELS), jnp.float32) * 0.05
    w1 = jax.random.normal(k_w1, (CONV_OUT_CHANNELS, FC1_OUT), jnp.float32) * 0.05
    b1 = jax.random.normal(k_b1, (1, FC1_OUT), jnp.float32) * 0.05
    w2 = jax.random.normal(k_w2, (FC1_OUT, NUM_CLASSES), jnp.float32) * 0.05
    b2 = jax.random.normal(k_b2, (1, NUM_CLASSES), jnp.float32) * 0.05

    # Backbone stand-in (glue) -> Pallas head kernel.
    features = standin_backbone(x_3d, proj)           # (B, T, FEAT_DIM)
    logits = resnet_onedconv_head(features, w_conv, b_conv, w1, b1, w2, b2)
    logits = jax.block_until_ready(logits)

    ref = reference_head(features, w_conv, b_conv, w1, b1, w2, b2)
    assert logits.shape == (B, NUM_CLASSES)
    assert jnp.allclose(logits, ref, atol=1e-2, rtol=1e-2), "mismatch vs reference"

    print("KERNEL_OK")
</pallas_src>

<mosaic_0001>
module attributes {stable_mosaic.version = 11 : i64} {
  func.func @_head_kernel(%arg0: i32, %arg1: memref<8x8x128xbf16, #tpu.memory_space<vmem>>, %arg2: memref<128x768xbf16, #tpu.memory_space<vmem>>, %arg3: memref<1x256xf32, #tpu.memory_space<vmem>>, %arg4: memref<256x128xbf16, #tpu.memory_space<vmem>>, %arg5: memref<1x128xf32, #tpu.memory_space<vmem>>, %arg6: memref<128x128xbf16, #tpu.memory_space<vmem>>, %arg7: memref<1x128xf32, #tpu.memory_space<vmem>>, %arg8: memref<8x128xf32, #tpu.memory_space<vmem>>) attributes {dimension_semantics = [#tpu.dimension_semantics<parallel>], iteration_bounds = array<i64: 1>, scalar_prefetch = 0 : i64, scratch_operands = 0 : i64, tpu.core_type = #tpu.core_type<tc>, window_params = [{transform_indices = @transform_0, window_bounds = array<i64: 8, 8, 128>}, {pipeline_mode = #tpu.pipeline_mode<synchronous>, transform_indices = @transform_1, window_bounds = array<i64: 128, 768>}, {pipeline_mode = #tpu.pipeline_mode<synchronous>, transform_indices = @transform_2, window_bounds = array<i64: 1, 256>}, {pipeline_mode = #tpu.pipeline_mode<synchronous>, transform_indices = @transform_3, window_bounds = array<i64: 256, 128>}, {pipeline_mode = #tpu.pipeline_mode<synchronous>, transform_indices = @transform_4, window_bounds = array<i64: 1, 128>}, {pipeline_mode = #tpu.pipeline_mode<synchronous>, transform_indices = @transform_5, window_bounds = array<i64: 128, 128>}, {pipeline_mode = #tpu.pipeline_mode<synchronous>, transform_indices = @transform_6, window_bounds = array<i64: 1, 128>}, {transform_indices = @transform_7, window_bounds = array<i64: 8, 128>}]} {
    %c0 = arith.constant 0 : index
    %c0_0 = arith.constant 0 : index
    %c0_1 = arith.constant 0 : index
    %0 = vector.load %arg1[%c0, %c0_0, %c0_1] : memref<8x8x128xbf16, #tpu.memory_space<vmem>>, vector<8x8x128xbf16>
    %1 = vector.shape_cast %0 : vector<8x8x128xbf16> to vector<64x128xbf16>
    %c0_2 = arith.constant 0 : index
    %c0_3 = arith.constant 0 : index
    %2 = vector.load %arg2[%c0_2, %c0_3] : memref<128x768xbf16, #tpu.memory_space<vmem>>, vector<128x768xbf16>
    %cst = arith.constant dense<0.000000e+00> : vector<64x768xf32>
    %3 = tpu.matmul %1, %2, %cst {dimension_numbers = #tpu.dot_dimension_numbers<[1], [0], [0], [1], [0, 0, 1, 1], [], []>} : vector<64x128xbf16>, vector<128x768xbf16>, vector<64x768xf32> -> vector<64x768xf32>
    %4 = vector.shape_cast %3 : vector<64x768xf32> to vector<8x8x768xf32>
    %5 = vector.extract_strided_slice %4 {offsets = [0, 0, 0], sizes = [8, 6, 256], strides = [1, 1, 1]} : vector<8x8x768xf32> to vector<8x6x256xf32>
    %6 = vector.extract_strided_slice %4 {offsets = [0, 1, 256], sizes = [8, 6, 256], strides = [1, 1, 1]} : vector<8x8x768xf32> to vector<8x6x256xf32>
    %7 = arith.addf %5, %6 : vector<8x6x256xf32>
    %8 = vector.extract_strided_slice %4 {offsets = [0, 2, 512], sizes = [8, 6, 256], strides = [1, 1, 1]} : vector<8x8x768xf32> to vector<8x6x256xf32>
    %9 = arith.addf %7, %8 : vector<8x6x256xf32>
    %cst_4 = arith.constant dense<0xFF800000> : vector<8x256xf32>
    %10 = vector.multi_reduction <maximumf>, %9, %cst_4 [1] : vector<8x6x256xf32> to vector<8x256xf32>
    %c0_5 = arith.constant 0 : index
    %c0_6 = arith.constant 0 : index
    %11 = vector.load %arg3[%c0_5, %c0_6] : memref<1x256xf32, #tpu.memory_space<vmem>>, vector<1x256xf32>
    %12 = vector.broadcast %11 : vector<1x256xf32> to vector<8x256xf32>
    %13 = arith.addf %10, %12 : vector<8x256xf32>
    %cst_7 = arith.constant 0.000000e+00 : f32
    %14 = vector.broadcast %cst_7 : f32 to vector<8x256xf32>
    %15 = arith.maximumf %13, %14 : vector<8x256xf32>
    %16 = arith.truncf %15 : vector<8x256xf32> to vector<8x256xbf16>
    %c0_8 = arith.constant 0 : index
    %c0_9 = arith.constant 0 : index
    %17 = vector.load %arg4[%c0_8, %c0_9] : memref<256x128xbf16, #tpu.memory_space<vmem>>, vector<256x128xbf16>
    %cst_10 = arith.constant dense<0.000000e+00> : vector<8x128xf32>
    %18 = tpu.matmul %16, %17, %cst_10 {dimension_numbers = #tpu.dot_dimension_numbers<[1], [0], [0], [1], [0, 0, 1, 1], [], []>} : vector<8x256xbf16>, vector<256x128xbf16>, vector<8x128xf32> -> vector<8x128xf32>
    %c0_11 = arith.constant 0 : index
    %c0_12 = arith.constant 0 : index
    %19 = vector.load %arg5[%c0_11, %c0_12] : memref<1x128xf32, #tpu.memory_space<vmem>>, vector<1x128xf32>
    %20 = vector.broadcast %19 : vector<1x128xf32> to vector<8x128xf32>
    %21 = arith.addf %18, %20 : vector<8x128xf32>
    %cst_13 = arith.constant 0.000000e+00 : f32
    %22 = vector.broadcast %cst_13 : f32 to vector<8x128xf32>
    %23 = arith.maximumf %21, %22 : vector<8x128xf32>
    %24 = arith.truncf %23 : vector<8x128xf32> to vector<8x128xbf16>
    %c0_14 = arith.constant 0 : index
    %c0_15 = arith.constant 0 : index
    %25 = vector.load %arg6[%c0_14, %c0_15] : memref<128x128xbf16, #tpu.memory_space<vmem>>, vector<128x128xbf16>
    %cst_16 = arith.constant dense<0.000000e+00> : vector<8x128xf32>
    %26 = tpu.matmul %24, %25, %cst_16 {dimension_numbers = #tpu.dot_dimension_numbers<[1], [0], [0], [1], [0, 0, 1, 1], [], []>} : vector<8x128xbf16>, vector<128x128xbf16>, vector<8x128xf32> -> vector<8x128xf32>
    %c0_17 = arith.constant 0 : index
    %c0_18 = arith.constant 0 : index
    %27 = vector.load %arg7[%c0_17, %c0_18] : memref<1x128xf32, #tpu.memory_space<vmem>>, vector<1x128xf32>
    %28 = vector.broadcast %27 : vector<1x128xf32> to vector<8x128xf32>
    %29 = arith.addf %26, %28 : vector<8x128xf32>
    %c0_19 = arith.constant 0 : index
    %c0_20 = arith.constant 0 : index
    %30 = vector.load %arg8[%c0_19, %c0_20] : memref<8x128xf32, #tpu.memory_space<vmem>>, vector<8x128xf32>
    tpu.vector_store %arg8[%c0_19, %c0_20], %29 {strides = array<i32>} : memref<8x128xf32, #tpu.memory_space<vmem>>, vector<8x128xf32>,
    return
  }
  func.func @transform_0(%arg0: i32) -> (i32, i32, i32) {
    %c0_i32 = arith.constant 0 : i32
    %c0_i32_0 = arith.constant 0 : i32
    %c0_i32_1 = arith.constant 0 : i32
    return %arg0, %c0_i32, %c0_i32_0 : i32, i32, i32
  }
  func.func @transform_1(%arg0: i32) -> (i32, i32) {
    %c0_i32 = arith.constant 0 : i32
    %c0_i32_0 = arith.constant 0 : i32
    %c0_i32_1 = arith.constant 0 : i32
    return %c0_i32, %c0_i32_0 : i32, i32
  }
  func.func @transform_2(%arg0: i32) -> (i32, i32) {
    %c0_i32 = arith.constant 0 : i32
    %c0_i32_0 = arith.constant 0 : i32
    %c0_i32_1 = arith.constant 0 : i32
    return %c0_i32, %c0_i32_0 : i32, i32
  }
  func.func @transform_3(%arg0: i32) -> (i32, i32) {
    %c0_i32 = arith.constant 0 : i32
    %c0_i32_0 = arith.constant 0 : i32
    %c0_i32_1 = arith.constant 0 : i32
    return %c0_i32, %c0_i32_0 : i32, i32
  }
  func.func @transform_4(%arg0: i32) -> (i32, i32) {
    %c0_i32 = arith.constant 0 : i32
    %c0_i32_0 = arith.constant 0 : i32
    %c0_i32_1 = arith.constant 0 : i32
    return %c0_i32, %c0_i32_0 : i32, i32
  }
  func.func @transform_5(%arg0: i32) -> (i32, i32) {
    %c0_i32 = arith.constant 0 : i32
    %c0_i32_0 = arith.constant 0 : i32
    %c0_i32_1 = arith.constant 0 : i32
    return %c0_i32, %c0_i32_0 : i32, i32
  }
  func.func @transform_6(%arg0: i32) -> (i32, i32) {
    %c0_i32 = arith.constant 0 : i32
    %c0_i32_0 = arith.constant 0 : i32
    %c0_i32_1 = arith.constant 0 : i32
    return %c0_i32, %c0_i32_0 : i32, i32
  }
  func.func @transform_7(%arg0: i32) -> (i32, i32) {
    %c0_i32 = arith.constant 0 : i32
    %c0_i32_0 = arith.constant 0 : i32
    return %arg0, %c0_i32 : i32, i32
  }
}

</mosaic_0001>

<bundles_post_ra>
// kernel: tpu_custom_call.1
= control target key start
LH: loop header
LB: loop body
LE: loop exit
PB: predicated region body
PF: predicated region fallthrough
CT: control target
= control target key end

     0   :  { %12 = vsyncpa [#allocation3], 0  ;;  %s1949_s0 = inlined_call_operand.hbm [shape: bf16[8,8,128], index: 0, kind: input, shape index: {}]   ;;  %s1950_s1 = inlined_call_operand.hbm [shape: bf16[128,768], index: 1, kind: input, shape index: {}]   ;;  %s1951_s2 = inlined_call_operand.vmem [shape: f32[1,256], index: 2, kind: input, shape index: {}]   ;;  %s1952_s3 = inlined_call_operand.hbm [shape: bf16[256,128], index: 3, kind: input, shape index: {}]   ;;  %s1953_s4 = inlined_call_operand.vmem [shape: f32[1,128], index: 4, kind: input, shape index: {}]   ;;  %s1954_s5 = inlined_call_operand.hbm [shape: bf16[128,128], index: 5, kind: input, shape index: {}]   ;;  %s1955_s6 = inlined_call_operand.vmem [shape: f32[1,128], index: 6, kind: input, shape index: {}]   ;;  %s1956_s7 = inlined_call_operand.hbm [shape: f32[8,128], index: 7, kind: output, shape index: {}]  }
   0x1   :  { %13 = vsyncpa [#allocation6], 0 }
   0x2   :  { %14 = vsyncpa [#allocation9], 0 }
   0x3   :  { %15 = vsyncpa [#allocation4], 0  ;;  %s1659_s24 = smov [#allocation5]   ;;  %s1541_s28 = scalar_lea.hbm %s1950_s1, 6144 }
   0x4   :  { %s33_s25 = sshll.u32 %s1659_s24, 4  ;;  %p1542_p0 = scmp.ne.s32.totalorder %s1950_s1, %s1541_s28  ;;  %s34_s25 = int_to_ptr.vmem [resolvable:$true] %s33_s25 }
   0x5   :  { %p1545_p1 = scmp.lt.u32.totalorder %s1541_s28, %s1950_s1 }
   0x7   :  { %p1547_p2 = pnand %p1545_p1, %p1542_p0 }
   0x9   :  { %1550 = shalt.err (!%p1547_p2)
}
   0xa   :  { %s1551_s10 = scalar_lea.vmem %s34_s25, 6144  ;;  %p1556_p4 = scmp.lt.s32.totalorder %s34_s25, %s34_s25 }
   0xb   :  { %p1552_p3 = scmp.ne.s32.totalorder %s34_s25, %s1551_s10  ;;  %p1557_p5 = scmp.lt.s32.totalorder %s1551_s10, %s1551_s10 }
   0xd   :  { %p1558_p6 = por %p1557_p5, %p1556_p4 }
   0xf   :  { %p1559_p7 = pnand %p1558_p6, %p1552_p3 }
  0x11   :  { %1562 = shalt.err (!%p1559_p7)
}
  0x12   :  { %s1660_s11 = smov 384   ;;  %s1661_s12 = smov 24  }
  0x13   :  { %39 = dma.hbm_to_vmem [thread:$0]  %s1950_s1, 6144, %s34_s25, [#allocation6], %s1660_s11, %s1660_s11, %s1661_s12  }
  0x14   :  { %s1662_s15 = smov [#allocation2]   ;;  %s1563_s19 = scalar_lea.hbm %s1949_s0, 512 }
  0x15   :  { %s21_s16 = sshll.u32 %s1662_s15, 4  ;;  %p1564_p8 = scmp.ne.s32.totalorder %s1949_s0, %s1563_s19  ;;  %s22_s16 = int_to_ptr.vmem [resolvable:$true] %s21_s16 }
  0x16   :  { %p1567_p9 = scmp.lt.u32.totalorder %s1563_s19, %s1949_s0 }
  0x18   :  { %p1569_p10 = pnand %p1567_p9, %p1564_p8 }
  0x1a   :  { %1572 = shalt.err (!%p1569_p10)
}
  0x1b   :  { %s1573_s24 = scalar_lea.vmem %s22_s16, 512  ;;  %p1578_p12 = scmp.lt.s32.totalorder %s22_s16, %s22_s16 }
  0x1c   :  { %p1574_p11 = scmp.ne.s32.totalorder %s22_s16, %s1573_s24  ;;  %p1579_p13 = scmp.lt.s32.totalorder %s1573_s24, %s1573_s24 }
  0x1e   :  { %p1580_p0 = por %p1579_p13, %p1578_p12 }
  0x20   :  { %p1581_p1 = pnand %p1580_p0, %p1574_p11 }
  0x22   :  { %1584 = shalt.err (!%p1581_p1)
}
  0x23   :  { %s1663_s1 = smov 64   ;;  %s1664_s25 = smov 4  }
  0x24   :  { %27 = dma.hbm_to_vmem [thread:$0]  %s1949_s0, 512, %s22_s16, [#allocation3], %s1663_s1, %s1663_s1, %s1664_s25  }
  0x25   :  { %s1665_s28 = smov [#allocation7]   ;;  %s1666_s30 = smov [#allocation8]  }
  0x26   :  { %s47_s29 = sshll.u32 %s1665_s28, 4  ;;  %s61_s8 = sshll.u32 %s1666_s30, 4  ;;  %s48_s29 = int_to_ptr.vmem [resolvable:$true] %s47_s29  ;;  %s1738_s8 = int_to_ptr.vmem [resolvable:$true] %s61_s8 }
  0x27   :  { %s1585_s11 = scalar_lea.hbm %s1952_s3, 2048 }
  0x28   :  { %p1586_p2 = scmp.ne.s32.totalorder %s1952_s3, %s1585_s11  ;;  %p1589_p3 = scmp.lt.u32.totalorder %s1585_s11, %s1952_s3 }
  0x2a   :  { %p1591_p4 = pnand %p1589_p3, %p1586_p2 }
  0x2c   :  { %1594 = shalt.err (!%p1591_p4)
}
  0x2d   :  { %s1595_s0 = scalar_lea.vmem %s48_s29, 2048  ;;  %p1600_p6 = scmp.lt.s32.totalorder %s48_s29, %s48_s29 }
  0x2e   :  { %p1596_p5 = scmp.ne.s32.totalorder %s48_s29, %s1595_s0  ;;  %p1601_p7 = scmp.lt.s32.totalorder %s1595_s0, %s1595_s0 }
  0x30   :  { %p1602_p8 = por %p1601_p7, %p1600_p6 }
  0x32   :  { %p1603_p9 = pnand %p1602_p8, %p1596_p5 }
  0x34   :  { %1606 = shalt.err (!%p1603_p9)
}
  0x35   :  { %53 = dma.hbm_to_vmem [thread:$0]  %s1952_s3, 2048, %s48_s29, [#allocation6], %s1663_s1, %s1663_s1, %s1664_s25  }
  0x36   :  { %s1607_s20 = scalar_lea.hbm %s1954_s5, 1024 }
  0x37   :  { %p1608_p10 = scmp.ne.s32.totalorder %s1954_s5, %s1607_s20  ;;  %p1611_p11 = scmp.lt.u32.totalorder %s1607_s20, %s1954_s5 }
  0x39   :  { %p1613_p12 = pnand %p1611_p11, %p1608_p10 }
  0x3b   :  { %1616 = shalt.err (!%p1613_p12)
}
  0x3c   :  { %s1617_s26 = scalar_lea.vmem %s1738_s8, 1024  ;;  %p1622_p0 = scmp.lt.s32.totalorder %s1738_s8, %s1738_s8 }
  0x3d   :  { %p1618_p13 = scmp.ne.s32.totalorder %s1738_s8, %s1617_s26  ;;  %p1623_p1 = scmp.lt.s32.totalorder %s1617_s26, %s1617_s26 }
  0x3f   :  { %p1624_p2 = por %p1623_p1, %p1622_p0 }
  0x41   :  { %p1625_p3 = pnand %p1624_p2, %p1618_p13 }
  0x43   :  { %1628 = shalt.err (!%p1625_p3)
}
  0x44   :  { %67 = dma.hbm_to_vmem [thread:$0]  %s1954_s5, 1024, %s1738_s8, [#allocation9], %s1663_s1, %s1663_s1, %s1664_s25  }
  0x45   :  { %1651 = dma.done.wait [#allocation3], 512  }
  0x46   :  { %1652 = vsyncadd [#allocation3], 4294966784 }
  0x47   :  { %1653 = dma.done.wait [#allocation6], 8192  }
  0x48   :  { %1654 = vsyncadd [#allocation6], 4294959104 }
  0x49   :  { %1655 = dma.done.wait [#allocation9], 1024  }
  0x4a   :  { %1656 = vsyncadd [#allocation9], 4294966272  ;;  %v1667_v0 = vmov 0   ;;  %v1441_v1 = vld [vmem:[#allocation5 + $0x4] ss:$24 sps:$4 sm:$0xff]   ;;  %v1496_v39 = vld [vmem:[#allocation2 + $0x8] sm:$0xff]  }
  0x4b   :  { %435 = vmatprep.mubr.bf16.mxu0 %v1667_v0  ;;  %508 = vmatprep.mubr.bf16.mxu1 %v1667_v0  ;;  %v1443_v2 = vld [vmem:[#allocation5 + $0xc] ss:$24 sps:$4 sm:$0xff]   ;;  %v1445_v3 = vld [vmem:[#allocation5] ss:$24 sps:$4 sm:$0xff]   ;;  %v1449_v6 = vld [vmem:[#allocation5 + $0x3c] ss:$24 sps:$4 sm:$0xff]  }
  0x4c   :  { %403 = vmatprep.subr.bf16.mxu0 %v1441_v1  ;;  %v1446_v4 = vld [vmem:[#allocation5 + $0x8] ss:$24 sps:$4 sm:$0xff]   ;;  %476 = vmatprep.subr.bf16.mxu1 %v1443_v2  ;;  %v1447_v5 = vld [vmem:[#allocation5 + $0x34] ss:$24 sps:$4 sm:$0xff]   ;;  %v1452_v8 = vld [vmem:[#allocation5 + $0x38] ss:$24 sps:$4 sm:$0xff]  }
  0x4d   :  { %404 = vmatpush1.bf16.msra.mxu0 %v1445_v3  ;;  %477 = vmatpush1.bf16.msra.mxu1 %v1446_v4  ;;  %v1451_v7 = vld [vmem:[#allocation5 + $0x30] ss:$24 sps:$4 sm:$0xff]   ;;  %v1453_v9 = vld [vmem:[#allocation5 + $0x64] ss:$24 sps:$4 sm:$0xff]   ;;  %v1457_v11 = vld [vmem:[#allocation5 + $0x60] ss:$24 sps:$4 sm:$0xff]  }
  0x4e   :  { %405 = vmatprep.subr.bf16.mxu0 %v1447_v5  ;;  %478 = vmatprep.subr.bf16.mxu1 %v1449_v6  ;;  %v1455_v10 = vld [vmem:[#allocation5 + $0x6c] ss:$24 sps:$4 sm:$0xff]   ;;  %v1458_v12 = vld [vmem:[#allocation5 + $0x68] ss:$24 sps:$4 sm:$0xff]   ;;  %v1461_v14 = vld [vmem:[#allocation5 + $0x9c] ss:$24 sps:$4 sm:$0xff]  }
  0x4f   :  { %v1459_v13 = vld [vmem:[#allocation5 + $0x94] ss:$24 sps:$4 sm:$0xff]   ;;  %v1463_v15 = vld [vmem:[#allocation5 + $0x90] ss:$24 sps:$4 sm:$0xff]   ;;  %v1465_v17 = vld [vmem:[#allocation5 + $0xc4] ss:$24 sps:$4 sm:$0xff]  }
  0x50   :  { %v1464_v16 = vld [vmem:[#allocation5 + $0x98] ss:$24 sps:$4 sm:$0xff]   ;;  %v1467_v18 = vld [vmem:[#allocation5 + $0xcc] ss:$24 sps:$4 sm:$0xff]   ;;  %v1470_v20 = vld [vmem:[#allocation5 + $0xc8] ss:$24 sps:$4 sm:$0xff]  }
  0x51   :  { %406 = vmatpush1.bf16.msra.mxu0 %v1451_v7  ;;  %479 = vmatpush1.bf16.msra.mxu1 %v1452_v8  ;;  %v1469_v19 = vld [vmem:[#allocation5 + $0xc0] ss:$24 sps:$4 sm:$0xff]   ;;  %v1471_v21 = vld [vmem:[#allocation5 + $0xf4] ss:$24 sps:$4 sm:$0xff]   ;;  %v1475_v23 = vld [vmem:[#allocation5 + $0xf0] ss:$24 sps:$4 sm:$0xff]  }
  0x52   :  { %407 = vmatprep.subr.bf16.mxu0 %v1453_v9  ;;  %480 = vmatprep.subr.bf16.mxu1 %v1455_v10  ;;  %v1473_v22 = vld [vmem:[#allocation5 + $0xfc] ss:$24 sps:$4 sm:$0xff]   ;;  %v1476_v24 = vld [vmem:[#allocation5 + $0xf8] ss:$24 sps:$4 sm:$0xff]   ;;  %v1479_v26 = vld [vmem:[#allocation5 + $0x12c] ss:$24 sps:$4 sm:$0xff]  }
  0x53   :  { %v1477_v25 = vld [vmem:[#allocation5 + $0x124] ss:$24 sps:$4 sm:$0xff]   ;;  %v1481_v27 = vld [vmem:[#allocation5 + $0x120] ss:$24 sps:$4 sm:$0xff]   ;;  %v1483_v29 = vld [vmem:[#allocation5 + $0x154] ss:$24 sps:$4 sm:$0xff]  }
  0x54   :  { %v1482_v28 = vld [vmem:[#allocation5 + $0x128] ss:$24 sps:$4 sm:$0xff]   ;;  %v1485_v30 = vld [vmem:[#allocation5 + $0x15c] ss:$24 sps:$4 sm:$0xff]   ;;  %v1488_v32 = vld [vmem:[#allocation5 + $0x158] ss:$24 sps:$4 sm:$0xff]  }
  0x55   :  { %408 = vmatpush1.bf16.msra.mxu0 %v1457_v11  ;;  %481 = vmatpush1.bf16.msra.mxu1 %v1458_v12  ;;  %v1487_v31 = vld [vmem:[#allocation5 + $0x150] ss:$24 sps:$4 sm:$0xff]   ;;  %v1492_v33 = vld [vmem:[#allocation5 + $0x14] ss:$24 sps:$4 sm:$0xff]   ;;  %v1489_v34 = vld [vmem:[#allocation2] sm:$0xff]   ;;  %v1668_v6 = vmov 0.0  }
  0x56   :  { %409 = vmatprep.subr.bf16.mxu0 %v1459_v13  ;;  %482 = vmatprep.subr.bf16.mxu1 %v1461_v14  ;;  %v1490_v35 = vld [vmem:[#allocation5 + $0x10] ss:$24 sps:$4 sm:$0xff]   ;;  %v1495_v36 = vld [vmem:[#allocation5 + $0x44] ss:$24 sps:$4 sm:$0xff]   ;;  %v1493_v37 = vld [vmem:[#allocation5 + $0x40] ss:$24 sps:$4 sm:$0xff]  }
  0x57   :  { %v1499_v38 = vld [vmem:[#allocation5 + $0x74] ss:$24 sps:$4 sm:$0xff]   ;;  %v1497_v40 = vld [vmem:[#allocation5 + $0x70] ss:$24 sps:$4 sm:$0xff]   ;;  %v1502_v41 = vld [vmem:[#allocation5 + $0xa4] ss:$24 sps:$4 sm:$0xff]  }
  0x58   :  { %v1500_v42 = vld [vmem:[#allocation5 + $0xa0] ss:$24 sps:$4 sm:$0xff]   ;;  %v1506_v43 = vld [vmem:[#allocation5 + $0xd4] ss:$24 sps:$4 sm:$0xff]   ;;  %v1504_v45 = vld [vmem:[#allocation5 + $0xd0] ss:$24 sps:$4 sm:$0xff]  }
  0x59   :  { %410 = vmatpush1.bf16.msra.mxu0 %v1463_v15  ;;  %483 = vmatpush1.bf16.msra.mxu1 %v1464_v16  ;;  %v1503_v44 = vld [vmem:[#allocation2 + $0x10] sm:$0xff]   ;;  %v1509_v46 = vld [vmem:[#allocation5 + $0x104] ss:$24 sps:$4 sm:$0xff]   ;;  %v1507_v47 = vld [vmem:[#allocation5 + $0x100] ss:$24 sps:$4 sm:$0xff]   ;;  %vm750_vm0 = vcmask 1045504  }
  0x5a   :  { %411 = vmatprep.subr.bf16.mxu0 %v1465_v17  ;;  %484 = vmatprep.subr.bf16.mxu1 %v1467_v18  ;;  %v1513_v48 = vld [vmem:[#allocation5 + $0x134] ss:$24 sps:$4 sm:$0xff]   ;;  %v1510_v49 = vld [vmem:[#allocation2 + $0x18] sm:$0xff]   ;;  %v1511_v50 = vld [vmem:[#allocation5 + $0x130] ss:$24 sps:$4 sm:$0xff]   ;;  %vm995_vm1 = vcmask 1041409  }
  0x5b   :  { %v1516_v51 = vld [vmem:[#allocation5 + $0x164] ss:$24 sps:$4 sm:$0xff]   ;;  %v1514_v52 = vld [vmem:[#allocation5 + $0x160] ss:$24 sps:$4 sm:$0xff]   ;;  %v1519_v55 = vld [vmem:[#allocation7 + $0x48] sm:$0xff]   ;;  %vm998_vm2 = vcmask 1042434  }
  0x5c   :  { %v1517_v53 = vld [vmem:[#allocation7 + $0x40] sm:$0xff]   ;;  %v1520_v56 = vld [vmem:[#allocation7 + $0x8] sm:$0xff]   ;;  %v1521_v57 = vld [vmem:[#allocation7 + $0x50] sm:$0xff]   ;;  %vm1001_vm3 = vcmask 1043459   ;;  %vm1004_vm4 = vcmask 1044484   ;;  %vm1007_vm5 = vcmask 1045509  }
  0x5d   :  { %412 = vmatpush1.bf16.msra.mxu0 %v1469_v19  ;;  %485 = vmatpush1.bf16.msra.mxu1 %v1470_v20  ;;  %v1518_v54 = vld [vmem:[#allocation7] sm:$0xff]   ;;  %v1522_v58 = vld [vmem:[#allocation7 + $0x10] sm:$0xff]   ;;  %v1523_v59 = vld [vmem:[#allocation7 + $0x58] sm:$0xff]   ;;  %vm1010_vm6 = vcmask 1046534   ;;  %vm1013_vm7 = vcmask 1047559   ;;  %vm1669_vm8 = vmmov 0  }
  0x5e   :  { %413 = vmatprep.subr.bf16.mxu0 %v1471_v21  ;;  %486 = vmatprep.subr.bf16.mxu1 %v1473_v22  ;;  %v1524_v60 = vld [vmem:[#allocation7 + $0x18] sm:$0xff]   ;;  %v1525_v61 = vld [vmem:[#allocation7 + $0x60] sm:$0xff]   ;;  %v1527_v63 = vld [vmem:[#allocation7 + $0x68] sm:$0xff]   ;;  %s1670_s30 = smov [#allocation10]  }
  0x5f   :  { %v1526_v62 = vld [vmem:[#allocation7 + $0x20] sm:$0xff]   ;;  %v1529_v1 = vld [vmem:[#allocation7 + $0x70] sm:$0xff]   ;;  %v1531_v3 = vld [vmem:[#allocation7 + $0x78] sm:$0xff]   ;;  %s1289_s8 = sshll.u32 %s1670_s30, 4  ;;  %s1290_s8 = int_to_ptr.vmem [resolvable:$true] %s1289_s8 }
  0x60   :  { %v1530_v2 = vld [vmem:[#allocation7 + $0x30] sm:$0xff]   ;;  %v1532_v4 = vld [vmem:[#allocation7 + $0x38] sm:$0xff]   ;;  %v1533_v5 = vld [vmem:[#allocation8] sm:$0xff]   ;;  %p1634_p5 = scmp.lt.s32.totalorder %s1290_s8, %s1290_s8 }
  0x61   :  { %414 = vmatpush1.bf16.msra.mxu0 %v1475_v23  ;;  %487 = vmatpush1.bf16.msra.mxu1 %v1476_v24  ;;  %v1534_v7 = vld [vmem:[#allocation8 + $0x8] sm:$0xff]   ;;  %v1535_v8 = vld [vmem:[#allocation8 + $0x10] sm:$0xff]   ;;  %v1536_v9 = vld [vmem:[#allocation8 + $0x18] sm:$0xff]  }
  0x62   :  { %415 = vmatprep.subr.bf16.mxu0 %v1477_v25  ;;  %488 = vmatprep.subr.bf16.mxu1 %v1479_v26  ;;  %v1537_v10 = vld [vmem:[#allocation8 + $0x20] sm:$0xff]   ;;  %v1538_v11 = vld [vmem:[#allocation8 + $0x28] sm:$0xff]  }
  0x65   :  { %416 = vmatpush1.bf16.msra.mxu0 %v1481_v27  ;;  %489 = vmatpush1.bf16.msra.mxu1 %v1482_v28 }
  0x66   :  { %417 = vmatprep.subr.bf16.mxu0 %v1483_v29  ;;  %490 = vmatprep.subr.bf16.mxu1 %v1485_v30 }
  0x69   :  { %418 = vmatpush1.bf16.msra.mxu0 %v1487_v31  ;;  %491 = vmatpush1.bf16.msra.mxu1 %v1488_v32 }
  0x6a   :  { %549 = vmatprep.subr.bf16.mxu0 %v1492_v33  ;;  %1378 = vmatprep.subr.bf16.mxu1 %v1517_v53 }
  0x6c   :  { %436 = vmatmul.mubr.bf16.vlgmr.msra.gmra.mrb[0].mxu0 %v1489_v34  ;;  %509 = vmatmul.mubr.bf16.vlgmr.msra.gmra.mrb[0].mxu1 %v1489_v34 }
  0x6d   :  { %550 = vmatpush1.bf16.msra.mxu0 %v1490_v35  ;;  %445 = vmatprep.mubr.bf16.mxu0 %v1667_v0 }
  0x6e   :  { %551 = vmatprep.subr.bf16.mxu0 %v1495_v36  ;;  %518 = vmatprep.mubr.bf16.mxu1 %v1667_v0 }
  0x6f   :  { %1379 = vmatpush3.bf16.msra.mxu1 %v1518_v54 }
  0x70   :  { %1380 = vmatprep.subr.bf16.mxu1 %v1519_v55 }
  0x71   :  { %552 = vmatpush1.bf16.msra.mxu0 %v1493_v37 }
  0x72   :  { %553 = vmatprep.subr.bf16.mxu0 %v1499_v38 }
  0x73   :  { %1381 = vmatpush3.bf16.msra.mxu1 %v1520_v56 }
  0x74   :  { %446 = vmatmul.mubr.bf16.gmra.mrb[4].mxu0 %v1496_v39  ;;  %519 = vmatmul.mubr.bf16.gmra.mrb[4].mxu1 %v1496_v39 }
  0x75   :  { %554 = vmatpush1.bf16.msra.mxu0 %v1497_v40  ;;  %455 = vmatprep.mubr.bf16.mxu0 %v1667_v0 }
  0x76   :  { %555 = vmatprep.subr.bf16.mxu0 %v1502_v41  ;;  %528 = vmatprep.mubr.bf16.mxu1 %v1667_v0 }
  0x77   :  { %1382 = vmatprep.subr.bf16.mxu1 %v1521_v57 }
  0x78   :  { %1383 = vmatpush3.bf16.msra.mxu1 %v1522_v58 }
  0x79   :  { %556 = vmatpush1.bf16.msra.mxu0 %v1500_v42  ;;  %1384 = vmatprep.subr.bf16.mxu1 %v1523_v59 }
  0x7a   :  { %557 = vmatprep.subr.bf16.mxu0 %v1506_v43 }
  0x7c   :  { %456 = vmatmul.mubr.bf16.gmra.mrb[8].mxu0 %v1503_v44  ;;  %529 = vmatmul.mubr.bf16.gmra.mrb[8].mxu1 %v1503_v44 }
  0x7d   :  { %558 = vmatpush1.bf16.msra.mxu0 %v1504_v45  ;;  %465 = vmatprep.mubr.bf16.mxu0 %v1667_v0 }
  0x7e   :  { %559 = vmatprep.subr.bf16.mxu0 %v1509_v46  ;;  %538 = vmatprep.mubr.bf16.mxu1 %v1667_v0 }
  0x7f   :  { %1385 = vmatpush3.bf16.msra.mxu1 %v1524_v60 }
  0x80   :  { %1386 = vmatprep.subr.bf16.mxu1 %v1525_v61 }
  0x81   :  { %560 = vmatpush1.bf16.msra.mxu0 %v1507_v47 }
  0x82   :  { %561 = vmatprep.subr.bf16.mxu0 %v1513_v48 }
  0x83   :  { %1387 = vmatpush3.bf16.msra.mxu1 %v1526_v62 }
  0x84   :  { %466 = vmatmul.mubr.bf16.gmra.mrb[12].mxu0 %v1510_v49  ;;  %539 = vmatmul.mubr.bf16.gmra.mrb[12].mxu1 %v1510_v49 }
  0x85   :  { %562 = vmatpush1.bf16.msra.mxu0 %v1511_v50  ;;  %581 = vmatprep.mubr.bf16.mxu0 %v1667_v0 }
  0x86   :  { %563 = vmatprep.subr.bf16.mxu0 %v1516_v51  ;;  %1388 = vmatprep.subr.bf16.mxu1 %v1527_v63 }
  0x89   :  { %564 = vmatpush1.bf16.msra.mxu0 %v1514_v52 }
  0x8a   :  { %1409 = vmatprep.subr.bf16.mxu0 %v1668_v6 }
  0x8c   :  { %582 = vmatmul.mubr.bf16.vlgmr.msra.gmra.mrb[16].mxu0 %v1489_v34 }
  0x8d   :  { %591 = vmatprep.mubr.bf16.mxu0 %v1667_v0  ;;  %1410 = vmatpush3.bf16.msra.mxu0 %v1533_v5 }
  0x8e   :  { %1411 = vmatprep.subr.bf16.mxu0 %v1668_v6 }
  0x91   :  { %1412 = vmatpush3.bf16.msra.mxu0 %v1534_v7 }
  0x92   :  { %1413 = vmatprep.subr.bf16.mxu0 %v1668_v6 }
  0x94   :  { %592 = vmatmul.mubr.bf16.gmra.mrb[20].mxu0 %v1496_v39 }
  0x95   :  { %601 = vmatprep.mubr.bf16.mxu0 %v1667_v0  ;;  %1414 = vmatpush3.bf16.msra.mxu0 %v1535_v8 }
  0x96   :  { %1415 = vmatprep.subr.bf16.mxu0 %v1668_v6 }
  0x99   :  { %1416 = vmatpush3.bf16.msra.mxu0 %v1536_v9 }
  0x9a   :  { %1417 = vmatprep.subr.bf16.mxu0 %v1668_v6 }
  0x9c   :  { %602 = vmatmul.mubr.bf16.gmra.mrb[24].mxu0 %v1503_v44 }
  0x9d   :  { %611 = vmatprep.mubr.bf16.mxu0 %v1667_v0  ;;  %v1528_v0 = vld [vmem:[#allocation7 + $0x28] sm:$0xff]   ;;  %1418 = vmatpush3.bf16.msra.mxu0 %v1537_v10 }
  0x9e   :  { %1389 = vmatpush3.bf16.msra.mxu1 %v1528_v0  ;;  %1419 = vmatprep.subr.bf16.mxu0 %v1668_v6 }
  0x9f   :  { %1390 = vmatprep.subr.bf16.mxu1 %v1529_v1 }
  0xa1   :  { %1420 = vmatpush3.bf16.msra.mxu0 %v1538_v11 }
  0xa2   :  { %1391 = vmatpush3.bf16.msra.mxu1 %v1530_v2  ;;  %1421 = vmatprep.subr.bf16.mxu0 %v1668_v6 }
  0xa3   :  { %1392 = vmatprep.subr.bf16.mxu1 %v1531_v3 }
  0xa4   :  { %612 = vmatmul.mubr.bf16.gmra.mrb[28].mxu0 %v1510_v49 }
  0xa5   :  { %1425 = vmatprep.mubr.msk.bf16.mxu0 %vm1669_vm8, %v1668_v6 }
  0xa6   :  { %1393 = vmatpush3.bf16.msra.mxu1 %v1532_v4 }
 0x13f   :  { %v437_v12 = vpop.f32.mrb[0].mxu0  ;;  %v510_v13 = vpop.f32.mrb[0].mxu1 }
 0x140   :  { %v638_v14 = vrot.slane %v510_v13, 1  ;;  %v439_v15 = vpop.f32.mrb[1].mxu0  ;;  %v512_v16 = vpop.f32.mrb[1].mxu1 }
 0x141   :  { %v639_v17 = vrot.slane %v512_v16, 1  ;;  %v441_v18 = vpop.f32.mrb[2].mxu0  ;;  %v514_v19 = vpop.f32.mrb[2].mxu1 }
 0x142   :  { %v1793_v20 = vadd.f32 %v638_v14, %v437_v12  ;;  %v640_v21 = vrot.slane %v514_v19, 1  ;;  %v443_v22 = vpop.f32.mrb[3].mxu0  ;;  %v516_v23 = vpop.f32.mrb[3].mxu1  ;;  %v865_v12 = vlaneseq }
 0x143   :  { %v1796_v24 = vadd.f32 %v639_v17, %v439_v15  ;;  %v641_v25 = vrot.slane %v516_v23, 1 }
 0x144   :  { %v1798_v26 = vadd.f32 %v640_v21, %v441_v18  ;;  %v866_v16 = vshrl.u32 %v865_v12, 7 }
 0x145   :  { %v1800_v27 = vadd.f32 %v641_v25, %v443_v22 }
 0x147   :  { %v447_v28 = vpop.f32.mrb[4].mxu0  ;;  %v520_v29 = vpop.f32.mrb[4].mxu1 }
 0x148   :  { %v642_v30 = vrot.slane %v520_v29, 1  ;;  %v449_v31 = vpop.f32.mrb[5].mxu0  ;;  %v522_v32 = vpop.f32.mrb[5].mxu1 }
 0x149   :  { %v643_v33 = vrot.slane %v522_v32, 1  ;;  %v451_v34 = vpop.f32.mrb[6].mxu0  ;;  %v524_v35 = vpop.f32.mrb[6].mxu1 }
 0x14a   :  { %v1802_v36 = vadd.f32 %v642_v30, %v447_v28  ;;  %v644_v37 = vrot.slane %v524_v35, 1  ;;  %v453_v38 = vpop.f32.mrb[7].mxu0  ;;  %v526_v39 = vpop.f32.mrb[7].mxu1  ;;  %v867_v30 = vsub.s32 0, %v866_v16  ;;  %v871_v35 = vsub.s32 1, %v866_v16 }
 0x14b   :  { %v1804_v40 = vadd.f32 %v643_v33, %v449_v31  ;;  %v645_v41 = vrot.slane %v526_v39, 1  ;;  %v863_v33 = vld [vmem:[%s1951_s2] sm:$0x3] }
 0x14c   :  { %v1806_v42 = vadd.f32 %v644_v37, %v451_v34 }
 0x14d   :  { %v1808_v43 = vadd.f32 %v645_v41, %v453_v38 }
 0x14f   :  { %v457_v44 = vpop.f32.mrb[8].mxu0  ;;  %v530_v45 = vpop.f32.mrb[8].mxu1 }
 0x150   :  { %v646_v46 = vrot.slane %v530_v45, 1  ;;  %v459_v47 = vpop.f32.mrb[9].mxu0  ;;  %v532_v48 = vpop.f32.mrb[9].mxu1  ;;  %v1837_v45 = vrot.slane %v863_v33, %v867_v30 }
 0x151   :  { %v647_v49 = vrot.slane %v532_v48, 1  ;;  %v461_v50 = vpop.f32.mrb[10].mxu0  ;;  %v534_v51 = vpop.f32.mrb[10].mxu1 }
 0x152   :  { %v1810_v52 = vadd.f32 %v646_v46, %v457_v44  ;;  %v648_v53 = vrot.slane %v534_v51, 1  ;;  %v463_v54 = vpop.f32.mrb[11].mxu0  ;;  %v536_v55 = vpop.f32.mrb[11].mxu1 }
 0x153   :  { %v1812_v56 = vadd.f32 %v647_v49, %v459_v47  ;;  %v649_v57 = vrot.slane %v536_v55, 1 }
 0x154   :  { %v1814_v58 = vadd.f32 %v648_v53, %v461_v50  ;;  %v1839_v50 = vrot.slane %v863_v33, %v871_v35 }
 0x155   :  { %v1816_v59 = vadd.f32 %v649_v57, %v463_v54 }
 0x157   :  { %v467_v60 = vpop.f32.mrb[12].mxu0  ;;  %v540_v61 = vpop.f32.mrb[12].mxu1 }
 0x158   :  { %v650_v62 = vrot.slane %v540_v61, 1  ;;  %v469_v63 = vpop.f32.mrb[13].mxu0  ;;  %v542_v0 = vpop.f32.mrb[13].mxu1 }
 0x159   :  { %v651_v1 = vrot.slane %v542_v0, 1  ;;  %v471_v2 = vpop.f32.mrb[14].mxu0  ;;  %v544_v3 = vpop.f32.mrb[14].mxu1 }
 0x15a   :  { %v1818_v4 = vadd.f32 %v650_v62, %v467_v60  ;;  %v652_v5 = vrot.slane %v544_v3, 1  ;;  %v473_v7 = vpop.f32.mrb[15].mxu0  ;;  %v546_v8 = vpop.f32.mrb[15].mxu1 }
 0x15b   :  { %v1820_v9 = vadd.f32 %v651_v1, %v469_v63  ;;  %v653_v10 = vrot.slane %v546_v8, 1 }
 0x15c   :  { %v1822_v11 = vadd.f32 %v652_v5, %v471_v2 }
 0x15d   :  { %v1824_v13 = vadd.f32 %v653_v10, %v473_v7 }
 0x15f   :  { %v583_v14 = vpop.f32.mrb[16].mxu0 }
 0x160   :  { %v702_v15 = vrot.slane %v583_v14, 2  ;;  %v585_v17 = vpop.f32.mrb[17].mxu0 }
 0x161   :  { %v703_v18 = vrot.slane %v585_v17, 2  ;;  %v587_v19 = vpop.f32.mrb[18].mxu0 }
 0x162   :  { %v734_v21 = vadd.f32 %v702_v15, %v1793_v20  ;;  %v704_v22 = vrot.slane %v587_v19, 2  ;;  %v589_v23 = vpop.f32.mrb[19].mxu0 }
 0x163   :  { %v735_v25 = vadd.f32 %v703_v18, %v1796_v24  ;;  %v705_v28 = vrot.slane %v589_v23, 2 }
 0x164   :  { %v751_v29 = vsel %vm750_vm0, %v734_v21, -inf  ;;  %v736_v31 = vadd.f32 %v704_v22, %v1798_v26 }
 0x165   :  { %v752_v32 = vrot.slane %v751_v29, 4  ;;  %v758_v34 = vsel %vm750_vm0, %v735_v25, -inf  ;;  %v737_v20 = vadd.f32 %v705_v28, %v1800_v27 }
 0x166   :  { %v759_v37 = vrot.slane %v758_v34, 4  ;;  %v765_v38 = vsel %vm750_vm0, %v736_v31, -inf }
 0x167   :  { %v753_v24 = vmax.f32 %v751_v29, %v752_v32  ;;  %v766_v39 = vrot.slane %v765_v38, 4  ;;  %v772_v41 = vsel %vm750_vm0, %v737_v20, -inf  ;;  %v593_v44 = vpop.f32.mrb[20].mxu0 }
 0x168   :  { %v760_v26 = vmax.f32 %v758_v34, %v759_v37  ;;  %v773_v46 = vrot.slane %v772_v41, 4  ;;  %v706_v47 = vrot.slane %v593_v44, 2  ;;  %v595_v48 = vpop.f32.mrb[21].mxu0 }
 0x169   :  { %v754_v49 = vrot.slane %v753_v24, 2  ;;  %v767_v51 = vmax.f32 %v765_v38, %v766_v39  ;;  %v707_v53 = vrot.slane %v595_v48, 2  ;;  %v597_v27 = vpop.f32.mrb[22].mxu0 }
 0x16a   :  { %v761_v54 = vrot.slane %v760_v26, 2  ;;  %v774_v55 = vmax.f32 %v772_v41, %v773_v46  ;;  %v738_v57 = vadd.f32 %v706_v47, %v1802_v36  ;;  %v708_v60 = vrot.slane %v597_v27, 2  ;;  %v599_v61 = vpop.f32.mrb[23].mxu0 }
 0x16b   :  { %v755_v62 = vmax.f32 %v753_v24, %v754_v49  ;;  %v768_v63 = vrot.slane %v767_v51, 2  ;;  %v739_v0 = vadd.f32 %v707_v53, %v1804_v40  ;;  %v709_v1 = vrot.slane %v599_v61, 2 }
 0x16c   :  { %v762_v2 = vmax.f32 %v760_v26, %v761_v54  ;;  %v775_v3 = vrot.slane %v774_v55, 2  ;;  %v779_v5 = vsel %vm750_vm0, %v738_v57, -inf  ;;  %v740_v7 = vadd.f32 %v708_v60, %v1806_v42 }
 0x16d   :  { %v756_v8 = vrot.slane %v755_v62, 1  ;;  %v769_v10 = vmax.f32 %v767_v51, %v768_v63  ;;  %v780_v12 = vrot.slane %v779_v5, 4  ;;  %v786_v14 = vsel %vm750_vm0, %v739_v0, -inf }
 0x16e   :  { %v763_v15 = vrot.slane %v762_v2, 1  ;;  %v776_v36 = vmax.f32 %v774_v55, %v775_v3  ;;  %v787_v16 = vrot.slane %v786_v14, 4  ;;  %v793_v17 = vsel %vm750_vm0, %v740_v7, -inf }
 0x16f   :  { %v757_v18 = vmax.f32 %v755_v62, %v756_v8  ;;  %v770_v19 = vrot.slane %v769_v10, 1  ;;  %v781_v40 = vmax.f32 %v779_v5, %v780_v12  ;;  %v794_v21 = vrot.slane %v793_v17, 4  ;;  %v603_v22 = vpop.f32.mrb[24].mxu0 }
 0x170   :  { %v764_v23 = vmax.f32 %v762_v2, %v763_v15  ;;  %v777_v25 = vrot.slane %v776_v36, 1  ;;  %v788_v28 = vmax.f32 %v786_v14, %v787_v16  ;;  %v741_v42 = vadd.f32 %v709_v1, %v1808_v43  ;;  %v605_v29 = vpop.f32.mrb[25].mxu0 }
 0x171   :  { %v875_v30 = vadd.f32 %v1837_v45, %v757_v18  ;;  %v771_v31 = vmax.f32 %v769_v10, %v770_v19  ;;  %v782_v32 = vrot.slane %v781_v40, 2  ;;  %v795_v33 = vmax.f32 %v793_v17, %v794_v21  ;;  %v1849_v34 = vpop.f32.mrb[26].mxu0 }
 0x172   :  { %v876_v35 = vadd.f32 %v1839_v50, %v764_v23  ;;  %v778_v20 = vmax.f32 %v776_v36, %v777_v25  ;;  %v789_v37 = vrot.slane %v788_v28, 2  ;;  %v800_v38 = vsel %vm750_vm0, %v741_v42, -inf  ;;  %v1853_v24 = vpop.f32.mrb[27].mxu0 }
 0x173   :  { %v891_v39 = vmax.f32 %v875_v30, 0.0  ;;  %v877_v43 = vadd.f32 %v1837_v45, %v771_v31  ;;  %v783_v41 = vmax.f32 %v781_v40, %v782_v32  ;;  %v796_v44 = vrot.slane %v795_v33, 2 }
 0x174   :  { %v892_v26 = vmax.f32 %v876_v35, 0.0  ;;  %v878_v46 = vadd.f32 %v1839_v50, %v778_v20  ;;  %v790_v47 = vmax.f32 %v788_v28, %v789_v37  ;;  %v801_v48 = vrot.slane %v800_v38, 4 }
 0x175   :  { %v907_v49 = vpack.c.bf16 %v891_v39, %v891_v39  ;;  %v893_v51 = vmax.f32 %v877_v43, 0.0  ;;  %v784_v53 = vrot.slane %v783_v41, 1  ;;  %v797_v27 = vmax.f32 %v795_v33, %v796_v44 }
 0x176   :  { %v1857_v54 = vpack.c.bf16 %v892_v26, %v892_v26  ;;  %v894_v55 = vmax.f32 %v878_v46, 0.0  ;;  %v791_v57 = vrot.slane %v790_v47, 1  ;;  %v802_v60 = vmax.f32 %v800_v38, %v801_v48 }
 0x177   :  { %v978_v61 = vunpack.c.l.b16 %v907_v49  ;;  %v909_v62 = vpack.c.bf16 %v893_v51, %v893_v51  ;;  %v785_v63 = vmax.f32 %v783_v41, %v784_v53  ;;  %v798_v0 = vrot.slane %v797_v27, 1  ;;  %v613_v1 = vpop.f32.mrb[28].mxu0 }
 0x178   :  { %v979_v2 = vunpack.c.l.b16 %v1857_v54  ;;  %v910_v3 = vpack.c.bf16 %v894_v55, %v894_v55  ;;  %v792_v5 = vmax.f32 %v790_v47, %v791_v57  ;;  %v803_v7 = vrot.slane %v802_v60, 2  ;;  %v1860_v8 = vpop.f32.mrb[29].mxu0 }
 0x179   :  { %v980_v10 = vunpack.c.l.b16 %v909_v62  ;;  %v879_v12 = vadd.f32 %v1837_v45, %v785_v63  ;;  %v799_v14 = vmax.f32 %v797_v27, %v798_v0  ;;  %v710_v15 = vrot.slane %v603_v22, 2  ;;  %v1863_v36 = vpop.f32.mrb[30].mxu0 }
 0x17a   :  { %v981_v16 = vunpack.c.l.b16 %v910_v3  ;;  %v880_v17 = vadd.f32 %v1839_v50, %v792_v5  ;;  %v804_v18 = vmax.f32 %v802_v60, %v803_v7  ;;  %v711_v19 = vrot.slane %v605_v29, 2  ;;  %v1866_v40 = vpop.f32.mrb[31].mxu0 }
 0x17b   :  { %v994_v21 = vrot.slane %v980_v10, 7  ;;  %v895_v23 = vmax.f32 %v879_v12, 0.0  ;;  %v881_v25 = vadd.f32 %v1837_v45, %v799_v14  ;;  %v742_v28 = vadd.f32 %v710_v15, %v1810_v52 }
 0x17c   :  { %v1870_v42 = vrot.slane %v981_v16, 7  ;;  %v896_v30 = vmax.f32 %v880_v17, 0.0  ;;  %v805_v31 = vrot.slane %v804_v18, 1  ;;  %v743_v22 = vadd.f32 %v711_v19, %v1812_v56 }
 0x17d   :  { %v1874_v32 = vsel %vm995_vm1, %v994_v21, %v978_v61  ;;  %v911_v33 = vpack.c.bf16 %v895_v23, %v895_v23  ;;  %v897_v35 = vmax.f32 %v881_v25, 0.0  ;;  %v807_v29 = vsel %vm750_vm0, %v742_v28, -inf }
 0x17e   :  { %v912_v20 = vpack.c.bf16 %v896_v30, %v896_v30  ;;  %v806_v37 = vmax.f32 %v804_v18, %v805_v31  ;;  %v808_v38 = vrot.slane %v807_v29, 4  ;;  %v814_v39 = vsel %vm750_vm0, %v743_v22, -inf }
 0x17f   :  { %v982_v43 = vunpack.c.l.b16 %v911_v33  ;;  %v913_v52 = vpack.c.bf16 %v897_v35, %v897_v35  ;;  %v815_v41 = vrot.slane %v814_v39, 4  ;;  %v712_v44 = vrot.slane %v1849_v34, 2 }
 0x180   :  { %v983_v26 = vunpack.c.l.b16 %v912_v20  ;;  %v882_v56 = vadd.f32 %v1839_v50, %v806_v37  ;;  %v809_v46 = vmax.f32 %v807_v29, %v808_v38  ;;  %v713_v47 = vrot.slane %v1853_v24, 2 }
 0x181   :  { %v1881_v48 = vrot.slane %v982_v43, 6  ;;  %v984_v49 = vunpack.c.l.b16 %v913_v52  ;;  %v816_v51 = vmax.f32 %v814_v39, %v815_v41  ;;  %v744_v53 = vadd.f32 %v712_v44, %v1814_v58 }
 0x182   :  { %v1884_v27 = vrot.slane %v983_v26, 6  ;;  %v898_v55 = vmax.f32 %v882_v56, 0.0  ;;  %v810_v57 = vrot.slane %v809_v46, 2  ;;  %v745_v60 = vadd.f32 %v713_v47, %v1816_v59 }
 0x183   :  { %v1887_v61 = vrot.slane %v984_v49, 5  ;;  %v817_v34 = vrot.slane %v816_v51, 2  ;;  %v821_v62 = vsel %vm750_vm0, %v744_v53, -inf  ;;  %v714_v63 = vrot.slane %v613_v1, 2 }
 0x184   :  { %v914_v0 = vpack.c.bf16 %v898_v55, %v898_v55  ;;  %v811_v24 = vmax.f32 %v809_v46, %v810_v57  ;;  %v822_v3 = vrot.slane %v821_v62, 4  ;;  %v828_v5 = vsel %vm750_vm0, %v745_v60, -inf }
 0x185   :  { %v818_v7 = vmax.f32 %v816_v51, %v817_v34  ;;  %v829_v10 = vrot.slane %v828_v5, 4  ;;  %v746_v58 = vadd.f32 %v714_v63, %v1818_v4  ;;  %v715_v12 = vrot.slane %v1860_v8, 2 }
 0x186   :  { %v985_v14 = vunpack.c.l.b16 %v914_v0  ;;  %v812_v15 = vrot.slane %v811_v24, 1  ;;  %v823_v59 = vmax.f32 %v821_v62, %v822_v3  ;;  %v716_v16 = vrot.slane %v1863_v36, 2 }
 0x187   :  { %v819_v17 = vrot.slane %v818_v7, 1  ;;  %v830_v18 = vmax.f32 %v828_v5, %v829_v10  ;;  %v835_v1 = vsel %vm750_vm0, %v746_v58, -inf  ;;  %v747_v19 = vadd.f32 %v715_v12, %v1820_v9 }
 0x188   :  { %v1896_v21 = vrot.slane %v985_v14, 5  ;;  %v813_v23 = vmax.f32 %v811_v24, %v812_v15  ;;  %v824_v25 = vrot.slane %v823_v59, 2  ;;  %v836_v28 = vrot.slane %v835_v1, 4 }
 0x189   :  { %v820_v30 = vmax.f32 %v818_v7, %v819_v17  ;;  %v831_v4 = vrot.slane %v830_v18, 2  ;;  %v842_v8 = vsel %vm750_vm0, %v747_v19, -inf  ;;  %v748_v31 = vadd.f32 %v716_v16, %v1822_v11 }
 0x18a   :  { %v883_v36 = vadd.f32 %v1837_v45, %v813_v23  ;;  %v825_v22 = vmax.f32 %v823_v59, %v824_v25  ;;  %v837_v33 = vmax.f32 %v835_v1, %v836_v28  ;;  %v843_v35 = vrot.slane %v842_v8, 4 }
 0x18b   :  { %v884_v9 = vadd.f32 %v1839_v50, %v820_v30  ;;  %v832_v29 = vmax.f32 %v830_v18, %v831_v4  ;;  %v849_v20 = vsel %vm750_vm0, %v748_v31, -inf  ;;  %v717_v37 = vrot.slane %v1866_v40, 2 }
 0x18c   :  { %v899_v38 = vmax.f32 %v883_v36, 0.0  ;;  %v826_v39 = vrot.slane %v825_v22, 1  ;;  %v838_v43 = vrot.slane %v837_v33, 2  ;;  %v844_v52 = vmax.f32 %v842_v8, %v843_v35 }
 0x18d   :  { %v900_v11 = vmax.f32 %v884_v9, 0.0  ;;  %v833_v41 = vrot.slane %v832_v29, 1  ;;  %v850_v44 = vrot.slane %v849_v20, 4  ;;  %v749_v26 = vadd.f32 %v717_v37, %v1824_v13 }
 0x18e   :  { %v915_v56 = vpack.c.bf16 %v899_v38, %v899_v38  ;;  %v827_v46 = vmax.f32 %v825_v22, %v826_v39  ;;  %v839_v47 = vmax.f32 %v837_v33, %v838_v43  ;;  %v845_v49 = vrot.slane %v844_v52, 2 }
 0x18f   :  { %v916_v51 = vpack.c.bf16 %v900_v11, %v900_v11  ;;  %v834_v53 = vmax.f32 %v832_v29, %v833_v41  ;;  %v851_v55 = vmax.f32 %v849_v20, %v850_v44  ;;  %v856_v57 = vsel %vm750_vm0, %v749_v26, -inf }
 0x190   :  { %v986_v40 = vunpack.c.l.b16 %v915_v56  ;;  %v885_v60 = vadd.f32 %v1837_v45, %v827_v46  ;;  %v840_v34 = vrot.slane %v839_v47, 1  ;;  %v846_v62 = vmax.f32 %v844_v52, %v845_v49 }
 0x191   :  { %v987_v63 = vunpack.c.l.b16 %v916_v51  ;;  %v886_v0 = vadd.f32 %v1839_v50, %v834_v53  ;;  %v852_v24 = vrot.slane %v851_v55, 2  ;;  %v857_v13 = vrot.slane %v856_v57, 4 }
 0x192   :  { %v1003_v3 = vrot.slane %v986_v40, 4  ;;  %v901_v5 = vmax.f32 %v885_v60, 0.0  ;;  %v841_v7 = vmax.f32 %v839_v47, %v840_v34  ;;  %v847_v10 = vrot.slane %v846_v62, 1  ;;  %v1539_v34 = vld [vmem:[#allocation8 + $0x30] sm:$0xff]  }
 0x193   :  { %v1021_v58 = vrot.slane %v987_v63, 4  ;;  %v902_v12 = vmax.f32 %v886_v0, 0.0  ;;  %v853_v14 = vmax.f32 %v851_v55, %v852_v24  ;;  %v858_v15 = vmax.f32 %v856_v57, %v857_v13  ;;  %1422 = vmatpush3.bf16.msra.mxu0 %v1539_v34  ;;  %v1352_v63 = vld [vmem:[%s1953_s4] ss:$0 sm:$0xff]  ;;  %s1629_s4 = scalar_lea.vmem %s1290_s8, 128 }
 0x194   :  { %v917_v59 = vpack.c.bf16 %v901_v5, %v901_v5  ;;  %v887_v16 = vadd.f32 %v1837_v45, %v841_v7  ;;  %v848_v17 = vmax.f32 %v846_v62, %v847_v10  ;;  %v999_v18 = vsel %vm998_vm2, %v1881_v48, %v1874_v32  ;;  %1423 = vmatprep.subr.bf16.mxu0 %v1668_v6  ;;  %p1630_p4 = scmp.ne.s32.totalorder %s1290_s8, %s1629_s4  ;;  %p1635_p6 = scmp.lt.s32.totalorder %s1629_s4, %s1629_s4 }
 0x195   :  { %v918_v1 = vpack.c.bf16 %v902_v12, %v902_v12  ;;  %v854_v19 = vrot.slane %v853_v14, 1  ;;  %v859_v23 = vrot.slane %v858_v15, 2  ;;  %v1002_v25 = vsel %vm1001_vm3, %v1887_v61, %v999_v18 }
 0x196   :  { %v988_v28 = vunpack.c.l.b16 %v917_v59  ;;  %v903_v30 = vmax.f32 %v887_v16, 0.0  ;;  %v888_v4 = vadd.f32 %v1839_v50, %v848_v17  ;;  %v1005_v8 = vsel %vm1004_vm4, %v1003_v3, %v1002_v25  ;;  %p1636_p7 = por %p1635_p6, %p1634_p5 }
 0x197   :  { %v989_v31 = vunpack.c.l.b16 %v918_v1  ;;  %v855_v36 = vmax.f32 %v853_v14, %v854_v19  ;;  %v860_v22 = vmax.f32 %v858_v15, %v859_v23  ;;  %v1016_v32 = vsel %vm995_vm1, %v1870_v42, %v979_v2 }
 0x198   :  { %v1006_v48 = vrot.slane %v988_v28, 3  ;;  %v919_v33 = vpack.c.bf16 %v903_v30, %v903_v30  ;;  %v904_v35 = vmax.f32 %v888_v4, 0.0  ;;  %v1018_v61 = vsel %vm998_vm2, %v1884_v27, %v1016_v32  ;;  %p1637_p8 = pnand %p1636_p7, %p1630_p4 }
 0x199   :  { %v889_v9 = vadd.f32 %v1837_v45, %v855_v36  ;;  %v861_v29 = vrot.slane %v860_v22, 1  ;;  %v1020_v20 = vsel %vm1001_vm3, %v1896_v21, %v1018_v61  ;;  %v1023_v37 = vrot.slane %v989_v31, 3 }
 0x19a   :  { %v990_v38 = vunpack.c.l.b16 %v919_v33  ;;  %v920_v39 = vpack.c.bf16 %v904_v35, %v904_v35  ;;  %v1008_v54 = vsel %vm1007_vm5, %v1006_v48, %v1005_v8  ;;  %v1022_v43 = vsel %vm1004_vm4, %v1021_v58, %v1020_v20  ;;  %v1369_v58 = vld [vmem:[%s1955_s6] ss:$0 sm:$0xff] }
 0x19b   :  { %v905_v2 = vmax.f32 %v889_v9, 0.0  ;;  %v862_v42 = vmax.f32 %v860_v22, %v861_v29  ;;  %v1024_v52 = vsel %vm1007_vm5, %v1023_v37, %v1022_v43 }
 0x19c   :  { %v1009_v11 = vrot.slane %v990_v38, 2  ;;  %v991_v27 = vunpack.c.l.b16 %v920_v39 }
 0x19d   :  { %v921_v41 = vpack.c.bf16 %v905_v2, %v905_v2  ;;  %v890_v45 = vadd.f32 %v1839_v50, %v862_v42  ;;  %v1540_v50 = vld [vmem:[#allocation8 + $0x38] sm:$0xff]  }
 0x19e   :  { %v1011_v44 = vsel %vm1010_vm6, %v1009_v11, %v1008_v54  ;;  %v1025_v26 = vrot.slane %v991_v27, 2  ;;  %1424 = vmatpush3.bf16.msra.mxu0 %v1540_v50 }
 0x19f   :  { %v992_v21 = vunpack.c.l.b16 %v921_v41  ;;  %v906_v56 = vmax.f32 %v890_v45, 0.0 }
 0x1a0   :  { %v1026_v46 = vsel %vm1010_vm6, %v1025_v26, %v1024_v52 }
 0x1a1   :  { %v922_v47 = vpack.c.bf16 %v906_v56, %v906_v56  ;;  %v1012_v49 = vrot.slane %v992_v21, 1 }
 0x1a3   :  { %v993_v51 = vunpack.c.l.b16 %v922_v47  ;;  %v1014_v53 = vsel %vm1013_vm7, %v1012_v49, %v1011_v44 }
 0x1a4   :  { %v1029_v60 = vpack.c.b16 %v1014_v53, %v1014_v53 }
 0x1a5   :  { %v1027_v55 = vrot.slane %v993_v51, 1 }
 0x1a7   :  { %v1028_v57 = vsel %vm1013_vm7, %v1027_v55, %v1026_v46 }
 0x1a8   :  { %v1030_v40 = vpack.c.b16 %v1028_v57, %v1028_v57 }
 0x1aa   :  { %1161 = vmatprep.mubr.bf16.mxu1 %v1030_v40 }
 0x1ab   :  { %1162 = vmatmul.mubr.bf16.vlgmr.msra.gmra.mrb[16].mxu1 %v1029_v60 }
 0x27e   :  { %v1394_v62 = vpop.f32.mrb[16].mxu1 }
 0x27f   :  { %v1395_v0 = vpop.f32.mrb[17].mxu1 }
 0x280   :  { %v1396_v24 = vadd.f32 %v1395_v0, %v1394_v62  ;;  %v1397_v13 = vpop.f32.mrb[18].mxu1 }
 0x281   :  { %v1398_v3 = vpop.f32.mrb[19].mxu1 }
 0x282   :  { %v1164_v5 = vadd.f32 %v1396_v24, %v1352_v63 }
 0x284   :  { %v1169_v7 = vmax.f32 %v1164_v5, 0.0 }
 0x286   :  { %v1170_v10 = vpack.c.bf16 %v1169_v7, %v1169_v7 }
 0x288   :  { %1426 = vmatmul.mubr.bf16.vlgmr.msra.gmra.mrb[32].mxu0 %v1170_v10 }
 0x35b   :  { %v1276_v6 = vpop.f32.mrb[32].mxu0 }
 0x35c   :  { %v1277_v12 = vadd.f32 %v1369_v58, %v1276_v6  ;;  %v1427_v14 = vpop.f32.mrb[33].mxu0 }
 0x35d   :  { %v1279_v15 = vpop.f32.mrb[34].mxu0 }
 0x35e   :  { %1282 = vst [vmem:[#allocation10] sm:$0xff] %v1277_v12  ;;  %v1428_v59 = vpop.f32.mrb[35].mxu0 }
 0x35f   :  { %1640 = shalt.err (!%p1637_p8)
}
 0x360   :  { %s1641_s6 = scalar_lea.hbm %s1956_s7, 128 }
 0x361   :  { %p1642_p9 = scmp.ne.s32.totalorder %s1956_s7, %s1641_s6  ;;  %p1645_p10 = scmp.lt.u32.totalorder %s1641_s6, %s1956_s7 }
 0x363   :  { %p1647_p11 = pnand %p1645_p10, %p1642_p9 }
 0x365   :  { %1650 = shalt.err (!%p1647_p11)
}
 0x366   :  { %1292 = dma.vmem_to_hbm [thread:$0]  %s1290_s8, 128, %s1956_s7, [#allocation4]  }
 0x367   :  { %1657 = dma.done.wait [#allocation4], 128  }
 0x368   :  { %1658 = vsyncadd [#allocation4], 4294967168 }
 0x369   :  { %1296 = vsyncpa [#allocation3], 1 }
 0x36a   :  { %1297 = vsyncpa [#allocation6], 1 }
 0x36b   :  { %1298 = vsyncpa [#allocation9], 1 }
 0x36c   :  { %1299 = vsyncpa [#allocation4], 1 }

</bundles_post_ra>
